<compile_context>
chip_gen: v6e
topology: v6e:2x2x1
jax: 0.10.0
libtpu: 0.0.40
codegen_flags: <defaults>
</compile_context>

<pallas_src>
import jax
import jax.numpy as jnp
from jax.experimental import pallas as pl
from jax.experimental.pallas import tpu as pltpu  # noqa: F401  (TPU backend)


def _controller_kernel(x_ref, w_ref, aff_ref, o_ref):
    """Single fused matvec + tanh + per-action affine fixup.

    x_ref:   (1, Daug)  input row with trailing 1.0 (bias column)
    w_ref:   (A, Daug)  weight with bias folded in as last column
    aff_ref: (A, 2)     col0 = scale, col1 = offset
    o_ref:   (A, 1)
    """
    # VPU broadcast-multiply + XLU lane reduction -> (A, 1); bias already folded.
    y = jnp.sum(w_ref[...] * x_ref[...], axis=-1, keepdims=True)
    th = jnp.tanh(y)                                            # EUP
    # th1[1] = (th1[1]+1)/2 ; th1[2] = (th1[2]+1)/2 as one fused mul-add.
    o_ref[...] = th * aff_ref[:, 0:1] + aff_ref[:, 1:2]


def make_controller(weight, bias, input_sizes):
    """One-time parameter setup; returns a jitted forward(*inputs) callable.

    weight: (action_size, in_features) in PyTorch convention (NOT transposed).
    bias:   (action_size,)
    input_sizes: static sizes of the pieces forward() will receive.
    """
    action_size, in_features = weight.shape
    input_sizes = tuple(int(s) for s in input_sizes)
    assert sum(input_sizes) == in_features, "weight in_features must match inputs"
    # The PyTorch forward indexes th1[1] and th1[2]; mirror that requirement.
    assert action_size >= 3, "Controller forward requires action_size >= 3"
    n = len(input_sizes)

    # ---- parameter-setup-time layout work (done once, off the hot path) ----
    w32 = jnp.asarray(weight, dtype=jnp.float32)
    b32 = jnp.asarray(bias, dtype=jnp.float32).reshape(action_size, 1)
    w_aug = jnp.concatenate([w32, b32], axis=1)                   # (A, D+1)
    d_aug = in_features + 1

    scale = jnp.ones((action_size,), jnp.float32).at[1].set(0.5).at[2].set(0.5)
    offset = jnp.zeros((action_size,), jnp.float32).at[1].set(0.5).at[2].set(0.5)
    aff = jnp.stack([scale, offset], axis=1)                      # (A, 2)

    # No grid: block shapes equal the full array shapes (satisfies tiling rules).
    call = pl.pallas_call(
        _controller_kernel,
        out_shape=jax.ShapeDtypeStruct((action_size, 1), jnp.float32),
        in_specs=[
            pl.BlockSpec((1, d_aug), lambda: (0, 0)),             # input row
            pl.BlockSpec((action_size, d_aug), lambda: (0, 0)),   # augmented weight
            pl.BlockSpec((action_size, 2), lambda: (0, 0)),       # scale/offset
        ],
        out_specs=pl.BlockSpec((action_size, 1), lambda: (0, 0)),
    )

    ones1 = jnp.ones((1,), jnp.float32)

    @jax.jit
    def forward(*inputs):
        assert len(inputs) == n
        # Explicit f32 cast mirrors the torch module's f32 parameters.
        xs = [jnp.asarray(x, jnp.float32).reshape(-1) for x in inputs]
        row = jnp.concatenate(xs + [ones1], axis=0).reshape(1, d_aug)
        out = call(row, w_aug, aff)                               # (A, 1)
        return out.reshape(action_size)                           # back to 1-D

    return forward


if __name__ == "__main__":
    # Module config (only_vae=False -> fc: Linear(latent+hidden, action))
    latent_size, hidden_size, action_size = 32, 32, 3
    only_vae = False

    key = jax.random.PRNGKey(0)
    k_lat, k_hid, k_w, k_b = jax.random.split(key, 4)

    latent = jax.random.normal(k_lat, (latent_size,), dtype=jnp.float32)
    hidden = jax.random.normal(k_hid, (hidden_size,), dtype=jnp.float32)

    in_features = latent_size if only_vae else latent_size + hidden_size
    # Deterministic synthetic parameters (PyTorch Linear-like uniform init).
    bound = 1.0 / (in_features ** 0.5)
    weight = jax.random.uniform(k_w, (action_size, in_features),
                                minval=-bound, maxval=bound, dtype=jnp.float32)
    bias = jax.random.uniform(k_b, (action_size,),
                              minval=-bound, maxval=bound, dtype=jnp.float32)

    input_sizes = (latent_size,) if only_vae else (latent_size, hidden_size)
    inputs = (latent,) if only_vae else (latent, hidden)

    forward = make_controller(weight, bias, input_sizes)
    out = jax.block_until_ready(forward(*inputs))

    # Pure-JAX reference check of the exact torch semantics.
    cat_in = jnp.concatenate(inputs, axis=0)
    ref = jnp.tanh(cat_in @ weight.T + bias)
    ref = ref.at[1].set((ref[1] + 1.0) / 2.0)
    ref = ref.at[2].set((ref[2] + 1.0) / 2.0)
    assert out.shape == (action_size,)
    assert jnp.allclose(out, ref, atol=1e-5, rtol=1e-5)

    print("KERNEL_OK")
</pallas_src>

<mosaic_0001>
module attributes {stable_mosaic.version = 11 : i64} {
  func.func @_controller_kernel(%arg0: memref<1x65xf32, #tpu.memory_space<vmem>>, %arg1: memref<3x65xf32, #tpu.memory_space<vmem>>, %arg2: memref<3x2xf32, #tpu.memory_space<vmem>>, %arg3: memref<3x1xf32, #tpu.memory_space<vmem>>) attributes {dimension_semantics = [], scalar_prefetch = 0 : i64, scratch_operands = 0 : i64, tpu.core_type = #tpu.core_type<tc>} {
    %c0 = arith.constant 0 : index
    %c0_0 = arith.constant 0 : index
    %0 = vector.load %arg1[%c0, %c0_0] : memref<3x65xf32, #tpu.memory_space<vmem>>, vector<3x65xf32>
    %c0_1 = arith.constant 0 : index
    %c0_2 = arith.constant 0 : index
    %1 = vector.load %arg0[%c0_1, %c0_2] : memref<1x65xf32, #tpu.memory_space<vmem>>, vector<1x65xf32>
    %2 = vector.broadcast %1 : vector<1x65xf32> to vector<3x65xf32>
    %3 = arith.mulf %0, %2 : vector<3x65xf32>
    %cst = arith.constant dense<0.000000e+00> : vector<3xf32>
    %4 = vector.multi_reduction <add>, %3, %cst [1] : vector<3x65xf32> to vector<3xf32>
    %5 = vector.shape_cast %4 : vector<3xf32> to vector<3x1xf32>
    %6 = math.tanh %5 : vector<3x1xf32>
    %c0_3 = arith.constant 0 : index
    %c0_4 = arith.constant 0 : index
    %7 = vector.load %arg2[%c0_3, %c0_4] : memref<3x2xf32, #tpu.memory_space<vmem>>, vector<3x1xf32>
    %8 = arith.mulf %6, %7 : vector<3x1xf32>
    %c0_5 = arith.constant 0 : index
    %c1 = arith.constant 1 : index
    %9 = vector.load %arg2[%c0_5, %c1] : memref<3x2xf32, #tpu.memory_space<vmem>>, vector<3x1xf32>
    %10 = arith.addf %8, %9 : vector<3x1xf32>
    %c0_6 = arith.constant 0 : index
    %c0_7 = arith.constant 0 : index
    %11 = vector.load %arg3[%c0_6, %c0_7] : memref<3x1xf32, #tpu.memory_space<vmem>>, vector<3x1xf32>
    tpu.vector_store %arg3[%c0_6, %c0_7], %10 {strides = array<i32>} : memref<3x1xf32, #tpu.memory_space<vmem>>, vector<3x1xf32>,
    return
  }
}

</mosaic_0001>

<bundles_post_ra>
// kernel: forward.1
= control target key start
LH: loop header
LB: loop body
LE: loop exit
PB: predicated region body
PF: predicated region fallthrough
CT: control target
= control target key end

     0   :  { %vm23_vm0 = vcmask 526336   ;;  %s45_s18 = smov 127   ;;  %vm35_vm1 = vcmask 2048   ;;  %s78_s0 = inlined_call_operand.vmem [shape: f32[1,65], index: 0, kind: input, shape index: {}]   ;;  %s79_s1 = inlined_call_operand.vmem [shape: f32[3,65], index: 1, kind: input, shape index: {}]   ;;  %s80_s2 = inlined_call_operand.vmem [shape: f32[3,2], index: 2, kind: input, shape index: {}]   ;;  %s81_s3 = inlined_call_operand.vmem [shape: f32[3,1], index: 3, kind: output, shape index: {}]  }
   0x1   :  { %v14_v0 = vld [vmem:[%s79_s1] sm:$0x7] }
   0x2   :  { %v41_v1 = vld [vmem:[%s78_s0] ss:$0 sm:$0xff] }
   0x3   :  { %v22_v2 = vmul.f32 %v41_v1, %v14_v0  ;;  %v28_v4 = vld [vmem:[%s80_s2] sm:$0x7] }
   0x5   :  { %v24_v3 = vsel %vm23_vm0, %v22_v2, 0.0 }
   0x6   :  { %25 = vadd.xlane.f32.xlu0 %v24_v3 }
  0x1c   :  { %31 = vrot.lane.b32.xlu0 %v28_v4, %s45_s18 }
  0x8f   :  { %v26_v5 = vpop.xlane.xlu0 %25 }
  0x90   :  { %43 = vtanh.f32 %v26_v5 }
  0x93   :  { %v32_v7 = vpop.permute.xlu0 %31 }
  0x9d   :  { %v44_v6 = vpop.eup %43 }
  0x9e   :  { %v29_v8 = vmul.f32 %v44_v6, %v28_v4 }
  0xa0   :  { %v34_v9 = vadd.f32 %v32_v7, %v29_v8 }
  0xa2   :  { %36 = vst.msk [vmem:[%s81_s3] sm:$0x7] %vm35_vm1, %v34_v9 }

</bundles_post_ra>
